<compile_context>
chip_gen: v5e
topology: v5e:2x2
jax: 0.10.0
libtpu: 0.0.40
codegen_flags: <defaults>
</compile_context>

<pallas_src>
import math

import jax
import jax.numpy as jnp
from jax.experimental import pallas as pl
from jax.experimental.pallas import tpu as pltpu

_TARGET_BLOCK_BYTES = 2 << 20      # ~2 MiB per buffer (per input / output tile)
_SMALL_2D_BYTES = 256 << 10        # below this, a single full-array 2-D block
_SINGLE_1D_MAX_BYTES = 2 << 20     # ragged totals up to this: one 1-D block
_MIN_GRID_STEPS = 8                # keep the parallel axis shardable (v7x 2 TCs)
_VMEM_LIMIT = 48 << 20             # explicit scoped-VMEM limit (v5e default is 16 MiB)


def _cdiv(a, b):
    return -(-a // b)


def _round_up(x, m):
    return _cdiv(x, m) * m


def _sublane(dtype):
    # Minimum second-to-last tile dim: 8 for 4-byte, 16 for 2-byte, 32 for 1-byte.
    return max(8, (8 * 4) // jnp.dtype(dtype).itemsize)


def _mix_kernel(w_ref, f1_ref, f2_ref, o_ref):
    # w_ref is a tiny f32 block ((1, 1) for 2-D tiles, (1,) for the 1-D path).
    # Computing sigmoid here is one EUP op per grid step (free VLIW slot) and
    # avoids a standalone wrapper-side XLA op whose dispatch overhead can rival
    # the whole kernel for small feature maps.
    m = 1.0 / (1.0 + jnp.exp(-w_ref[...]))
    m = m.astype(o_ref.dtype)              # keep bf16 blends in bf16 vregs
    f1 = f1_ref[...]
    f2 = f2_ref[...]
    # fea1*m + fea2*(1-m)  ==  fea2 + m*(fea1 - fea2)   (one fewer vmul)
    o_ref[...] = f2 + m * (f1 - f2)


def _mix_2d(w32, f1_2d, f2_2d):
    """Tiled, pipelined blend over a lane-dense (rows, cols) slab."""
    rows, cols = f1_2d.shape
    dtype = f1_2d.dtype
    itemsize = jnp.dtype(dtype).itemsize
    sub = _sublane(dtype)

    if rows * cols * itemsize <= _SMALL_2D_BYTES:
        block_rows = rows                               # full extent: always legal
    else:
        max_rows = max(sub, (_TARGET_BLOCK_BYTES // (cols * itemsize)) // sub * sub)
        want_rows = _round_up(_cdiv(rows, _MIN_GRID_STEPS), sub)
        block_rows = max(sub, min(max_rows, want_rows))

    grid = (_cdiv(rows, block_rows),)                   # ragged last block is clipped
    blk = pl.BlockSpec((block_rows, cols), lambda i: (i, 0))

    return pl.pallas_call(
        _mix_kernel,
        out_shape=jax.ShapeDtypeStruct((rows, cols), dtype),
        grid_spec=pl.GridSpec(
            grid=grid,
            in_specs=[
                pl.BlockSpec((1, 1), lambda i: (0, 0)),  # w (resident; same block)
                blk,                                     # fea1 tile
                blk,                                     # fea2 tile
            ],
            out_specs=blk,
        ),
        compiler_params=pltpu.CompilerParams(
            dimension_semantics=("parallel",),           # v7x: shard across 2 TCs
            vmem_limit_bytes=_VMEM_LIMIT),
    )(w32.reshape((1, 1)), f1_2d, f2_2d)


def mix_forward(fea1, fea2, w):
    """Pallas equivalent of Mix.forward.

    fea1, fea2: arrays of identical shape/dtype.
    w:          float32 array of shape (1,) -- the learnable scalar.
    """
    assert fea1.shape == fea2.shape and fea1.dtype == fea2.dtype
    shape = fea1.shape
    dtype = fea1.dtype
    total = math.prod(shape)
    itemsize = jnp.dtype(dtype).itemsize
    w32 = jnp.asarray(w, jnp.float32).reshape((1,))

    # Lane-dense 2-D view whenever the flat size is a multiple of 128 (all
    # reshapes here are free -- no pad, no output slice).
    cols = next((c for c in (512, 256, 128) if total % c == 0), None)
    if cols is not None:
        out = _mix_2d(w32,
                      fea1.reshape((total // cols, cols)),
                      fea2.reshape((total // cols, cols)))
        return out.reshape(shape)

    # Ragged total. In DeflickerNet, Mix only ever sees tiny (B, C, 1, 1)
    # tensors, so this path is small: one copy-free full-extent 1-D block.
    if total * itemsize <= _SINGLE_1D_MAX_BYTES:
        out = pl.pallas_call(
            _mix_kernel,
            out_shape=jax.ShapeDtypeStruct((total,), dtype),
            compiler_params=pltpu.CompilerParams(vmem_limit_bytes=_VMEM_LIMIT),
        )(w32, fea1.reshape((total,)), fea2.reshape((total,)))
        return out.reshape(shape)

    # TODO(synk): very large non-128-divisible totals still pay one extra HBM
    # pass for the pad/slice; not reachable from DeflickerNet's Mix usage.
    padded = _round_up(total, 128)
    f1p = jnp.pad(fea1.reshape((total,)), (0, padded - total))
    f2p = jnp.pad(fea2.reshape((total,)), (0, padded - total))
    out = _mix_2d(w32,
                  f1p.reshape((padded // 128, 128)),
                  f2p.reshape((padded // 128, 128)))
    return out.reshape((padded,))[:total].reshape(shape)


def mix_reference(fea1, fea2, w):
    m = jax.nn.sigmoid(jnp.asarray(w, jnp.float32).reshape(())[()])
    f1 = fea1.astype(jnp.float32)
    f2 = fea2.astype(jnp.float32)
    return f1 * m + f2 * (1.0 - m)


if __name__ == "__main__":
    key = jax.random.PRNGKey(0)
    keys = jax.random.split(key, 8)

    # Deterministic parameter init, matching nn.Parameter(FloatTensor([-0.8])).
    w = jnp.array([-0.8], dtype=jnp.float32)

    def check(f1, f2, atol, rtol):
        out = jax.block_until_ready(mix_forward(f1, f2, w))
        assert out.shape == f1.shape and out.dtype == f1.dtype
        ref = mix_reference(f1, f2, w)
        err = jnp.max(jnp.abs(out.astype(jnp.float32) - ref))
        assert bool(jnp.allclose(out.astype(jnp.float32), ref,
                                 atol=atol, rtol=rtol)), f"max_err={float(err)}"

    # 1) Tiny NCHW feature map, 128-divisible total -> single 2-D block (grid=1).
    f1 = jax.random.normal(keys[0], (2, 4, 16, 16), dtype=jnp.float32)
    f2 = jax.random.normal(keys[1], (2, 4, 16, 16), dtype=jnp.float32)
    check(f1, f2, atol=1e-5, rtol=1e-5)

    # 2) DTCA-style ragged total -> copy-free single 1-D block (no pad/slice).
    f1 = jax.random.normal(keys[2], (2, 3, 15, 17), dtype=jnp.float32)
    f2 = jax.random.normal(keys[3], (2, 3, 15, 17), dtype=jnp.float32)
    check(f1, f2, atol=1e-5, rtol=1e-5)

    # 3) Larger f32 map -> tiled 8-step grid with a clipped (ragged) last block.
    f1 = jax.random.normal(keys[4], (2, 16, 60, 64), dtype=jnp.float32)
    f2 = jax.random.normal(keys[5], (2, 16, 60, 64), dtype=jnp.float32)
    check(f1, f2, atol=1e-5, rtol=1e-5)

    # 4) bf16 map -> tiled grid with 16-row sublane alignment, bf16 blend.
    f1 = jax.random.normal(keys[6], (4, 16, 64, 64), dtype=jnp.bfloat16)
    f2 = jax.random.normal(keys[7], (4, 16, 64, 64), dtype=jnp.bfloat16)
    check(f1, f2, atol=1e-1, rtol=5e-2)

    print("KERNEL_OK")
</pallas_src>

<mosaic_0001>
module attributes {stable_mosaic.version = 11 : i64} {
  func.func @_mix_kernel(%arg0: i32, %arg1: memref<1x1xf32, #tpu.memory_space<vmem>>, %arg2: memref<4x512xf32, #tpu.memory_space<vmem>>, %arg3: memref<4x512xf32, #tpu.memory_space<vmem>>, %arg4: memref<4x512xf32, #tpu.memory_space<vmem>>) attributes {dimension_semantics = [#tpu.dimension_semantics<parallel>], iteration_bounds = array<i64: 1>, scalar_prefetch = 0 : i64, scratch_operands = 0 : i64, tpu.core_type = #tpu.core_type<tc>, window_params = [{pipeline_mode = #tpu.pipeline_mode<synchronous>, transform_indices = @transform_0, window_bounds = array<i64: 1, 1>}, {transform_indices = @transform_1, window_bounds = array<i64: 4, 512>}, {transform_indices = @transform_2, window_bounds = array<i64: 4, 512>}, {transform_indices = @transform_3, window_bounds = array<i64: 4, 512>}]} {
    %c0 = arith.constant 0 : index
    %c0_0 = arith.constant 0 : index
    %0 = vector.load %arg1[%c0, %c0_0] : memref<1x1xf32, #tpu.memory_space<vmem>>, vector<1x1xf32>
    %cst = arith.constant 0.000000e+00 : f32
    %1 = vector.broadcast %cst : f32 to vector<1x1xf32>
    %2 = arith.subf %1, %0 : vector<1x1xf32>
    %3 = math.exp %2 : vector<1x1xf32>
    %cst_1 = arith.constant 1.000000e+00 : f32
    %4 = vector.broadcast %cst_1 : f32 to vector<1x1xf32>
    %5 = arith.addf %4, %3 : vector<1x1xf32>
    %cst_2 = arith.constant 1.000000e+00 : f32
    %6 = vector.broadcast %cst_2 : f32 to vector<1x1xf32>
    %7 = arith.divf %6, %5 : vector<1x1xf32>
    %c0_3 = arith.constant 0 : index
    %c0_4 = arith.constant 0 : index
    %8 = vector.load %arg2[%c0_3, %c0_4] : memref<4x512xf32, #tpu.memory_space<vmem>>, vector<4x512xf32>
    %c0_5 = arith.constant 0 : index
    %c0_6 = arith.constant 0 : index
    %9 = vector.load %arg3[%c0_5, %c0_6] : memref<4x512xf32, #tpu.memory_space<vmem>>, vector<4x512xf32>
    %10 = arith.subf %8, %9 : vector<4x512xf32>
    %11 = vector.broadcast %7 : vector<1x1xf32> to vector<4x512xf32>
    %12 = arith.mulf %11, %10 : vector<4x512xf32>
    %13 = arith.addf %9, %12 : vector<4x512xf32>
    %c0_7 = arith.constant 0 : index
    %c0_8 = arith.constant 0 : index
    %14 = vector.load %arg4[%c0_7, %c0_8] : memref<4x512xf32, #tpu.memory_space<vmem>>, vector<4x512xf32>
    tpu.vector_store %arg4[%c0_7, %c0_8], %13 {strides = array<i32>} : memref<4x512xf32, #tpu.memory_space<vmem>>, vector<4x512xf32>,
    return
  }
  func.func @transform_0(%arg0: i32) -> (i32, i32) {
    %c0_i32 = arith.constant 0 : i32
    %c0_i32_0 = arith.constant 0 : i32
    %c0_i32_1 = arith.constant 0 : i32
    return %c0_i32, %c0_i32_0 : i32, i32
  }
  func.func @transform_1(%arg0: i32) -> (i32, i32) {
    %c0_i32 = arith.constant 0 : i32
    %c0_i32_0 = arith.constant 0 : i32
    return %arg0, %c0_i32 : i32, i32
  }
  func.func @transform_2(%arg0: i32) -> (i32, i32) {
    %c0_i32 = arith.constant 0 : i32
    %c0_i32_0 = arith.constant 0 : i32
    return %arg0, %c0_i32 : i32, i32
  }
  func.func @transform_3(%arg0: i32) -> (i32, i32) {
    %c0_i32 = arith.constant 0 : i32
    %c0_i32_0 = arith.constant 0 : i32
    return %arg0, %c0_i32 : i32, i32
  }
}

</mosaic_0001>

<bundles_post_ra>
// kernel: tpu_custom_call.1
= control target key start
LH: loop header
LB: loop body
LE: loop exit
PB: predicated region body
PF: predicated region fallthrough
CT: control target
= control target key end

     0   :  { %s224_s0 = inlined_call_operand.<no memory space> [shape: f32[1,1], index: 0, kind: input, shape index: {}]   ;;  %s225_s1 = inlined_call_operand.hbm [shape: f32[4,512], index: 1, kind: input, shape index: {}]   ;;  %s226_s2 = inlined_call_operand.hbm [shape: f32[4,512], index: 2, kind: input, shape index: {}]   ;;  %s227_s3 = inlined_call_operand.hbm [shape: f32[4,512], index: 3, kind: output, shape index: {}]  }
   0x1   :  { %v8_v0 = vstv %s224_s0 }
   0x2   :  { %9 = vst [vmem:[#allocation2] sm:$0x1] %v8_v0 }
   0x3   :  { %10 = vsyncpa [#allocation4], 0 }
   0x4   :  { %11 = vsyncpa [#allocation7], 0 }
   0x5   :  { %12 = vsyncpa [#allocation5], 0  ;;  %s20_s16 = sshll.u32 %s225_s1, 4  ;;  %s188_s17 = smov [#allocation3]   ;;  %s21_s16 = int_to_ptr.hbm [resolvable:$true] %s20_s16 }
   0x6   :  { %s22_s18 = sshll.u32 %s188_s17, 4  ;;  %s31_s21 = sshll.u32 %s226_s2, 4  ;;  %s23_s18 = int_to_ptr.vmem [resolvable:$true] %s22_s18  ;;  %s32_s21 = int_to_ptr.hbm [resolvable:$true] %s31_s21 }
   0x7   :  { %25 = dma.hbm_to_vmem [thread:$0]  %s21_s16, 256, %s23_s18, [#allocation4]  }
   0x8   :  { %s189_s22 = smov [#allocation6]  }
   0x9   :  { %s33_s0 = sshll.u32 %s189_s22, 4  ;;  %s34_s0 = int_to_ptr.vmem [resolvable:$true] %s33_s0 }
   0xa   :  { %36 = dma.hbm_to_vmem [thread:$0]  %s32_s21, 256, %s34_s0, [#allocation7]  }
   0xb   :  { %182 = dma.done.wait [#allocation4], 256  }
   0xc   :  { %183 = vsyncadd [#allocation4], 4294967040 }
   0xd   :  { %184 = dma.done.wait [#allocation7], 256  }
   0xe   :  { %185 = vsyncadd [#allocation7], 4294967040  ;;  %v190_v1 = vmov 0   ;;  %v45_v2 = vld [vmem:[#allocation2] sm:$0x1]  ;;  %v65_v18 = vld [vmem:[#allocation3] sm:$0xff] }
   0xf   :  { %105 = vset.pattern.permute.xlu0 %v190_v1  ;;  %v46_v3 = vsub.f32 0.0, %v45_v2  ;;  %v66_v19 = vld [vmem:[#allocation3 + $0x8] sm:$0xff]  ;;  %v67_v20 = vld [vmem:[#allocation6] sm:$0xff]  ;;  %v68_v21 = vld [vmem:[#allocation6 + $0x8] sm:$0xff]  ;;  %s191_s1 = smov [#allocation8]   ;;  %s90_s25 = sshll.u32 %s227_s3, 4  ;;  %s91_s25 = int_to_ptr.hbm [resolvable:$true] %s90_s25 }
  0x10   :  { %v69_v22 = vsub.f32 %v65_v18, %v67_v20  ;;  %v70_v23 = vsub.f32 %v66_v19, %v68_v21  ;;  %s88_s2 = sshll.u32 %s191_s1, 4  ;;  %s89_s2 = int_to_ptr.vmem [resolvable:$true] %s88_s2 }
  0x11   :  { %v47_v4 = vmul.f32 1.442695, %v46_v3 }
  0x13   :  { %106 = vpow2.f32 %v47_v4 }
  0x19   :  { %v107_v5 = vpop.eup %106 }
  0x1a   :  { %v49_v6 = vadd.f32 1.0, %v107_v5 }
  0x1c   :  { %108 = vrcp.f32 %v49_v6  ;;  %v61_v9 = vand.u32 2147483648, %v49_v6  ;;  %vm55_vm0 = vweird.f32 %v49_v6  ;;  %v59_v11 = vand.u32 2147483647, %v49_v6 }
  0x1e   :  { %v62_v13 = vor.u32 1.1754944e-38, %v61_v9  ;;  %vm60_vm3 = vcmp.eq.f32.partialorder %v59_v11, 8.507059e+37 }
  0x22   :  { %v109_v7 = vpop.eup %108 }
  0x23   :  { %v51_v8 = vmul.f32 %v109_v7, %v49_v6  ;;  %vm56_vm1 = vweird.f32 %v109_v7 }
  0x24   :  { %vm57_vm2 = vmor %vm55_vm0, %vm56_vm1 }
  0x25   :  { %v52_v10 = vsub.f32 1.0, %v51_v8 }
  0x27   :  { %v53_v12 = vmul.f32 %v109_v7, %v52_v10 }
  0x29   :  { %v54_v14 = vadd.f32 %v109_v7, %v53_v12 }
  0x2b   :  { %v58_v15 = vsel %vm57_vm2, %v109_v7, %v54_v14 }
  0x2c   :  { %v63_v16 = vsel %vm60_vm3, %v62_v13, %v58_v15 }
  0x2d   :  { %v72_v17 = vperm.slane %v63_v16, 0 }
  0x2f   :  { %74 = vperm.xlu0 %105, %v72_v17  }
  0xa1   :  { %v75_v24 = vpop.permute.xlu0 %74 }
  0xa2   :  { %v77_v25 = vmul.f32 %v75_v24, %v69_v22  ;;  %v78_v26 = vmul.f32 %v75_v24, %v70_v23 }
  0xa4   :  { %v79_v27 = vadd.f32 %v77_v25, %v67_v20  ;;  %v80_v28 = vadd.f32 %v78_v26, %v68_v21 }
  0xa6   :  { %81 = vst [vmem:[#allocation8] sm:$0xff] %v79_v27 }
  0xa7   :  { %82 = vst [vmem:[#allocation8 + $0x8] sm:$0xff] %v80_v28 }
  0xa8   :  { %93 = dma.vmem_to_hbm [thread:$0]  %s89_s2, 256, %s91_s25, [#allocation5]  }
  0xa9   :  { %186 = dma.done.wait [#allocation5], 256  }
  0xaa   :  { %187 = vsyncadd [#allocation5], 4294967040 }
  0xab   :  { %98 = vsyncpa [#allocation4], 1 }
  0xac   :  { %99 = vsyncpa [#allocation7], 1 }
  0xad   :  { %100 = vsyncpa [#allocation5], 1 }

</bundles_post_ra>
